<compile_context>
chip_gen: v5e
topology: v5e:2x2
jax: 0.10.0
libtpu: 0.0.40
codegen_flags: <defaults>
</compile_context>

<pallas_src>
import functools

import jax
import jax.numpy as jnp
import numpy as np
from jax.experimental import pallas as pl
from jax.experimental.pallas import tpu as pltpu


def _nearest_embed_kernel(x_ref, w_ref, wt2_ref, w2_ref, q_ref, idx_ref):
    # x_ref:   (1, C, T)  channels-first input tile (straight slice of NCHW, no transpose)
    # w_ref:   (C, K)     codebook
    # wt2_ref: (K, C)     pre-transposed, pre-scaled codebook (-2 * W^T)
    # w2_ref:  (K, 1)     precomputed ||w_k||^2 (f32)
    # q_ref:   (1, C, T)  quantized output tile (lane-dense)
    # idx_ref: (1, 1, T)  argmin indices (lane-dense)
    x = x_ref[0]                      # (C, T)
    w = w_ref[...]                    # (C, K)
    wt2 = wt2_ref[...]                # (K, C) == -2 * W^T
    K = w.shape[1]
    T = x.shape[1]

    # MXU: (K, C) @ (C, T) -> (K, T), f32 accumulate, exact-precision path for f32 inputs.
    xw = jnp.dot(wt2, x, preferred_element_type=jnp.float32,
                 precision=jax.lax.Precision.HIGHEST)               # (K, T) = -2 W^T x
    # argmin_k ||x_t - w_k||^2 == argmin_k (||w_k||^2 - 2 w_k . x_t)
    score = w2_ref[...] + xw                                        # (K, T), f32

    # argmin over the K (sublane) axis with first-index tie-break (matches torch.min).
    min_val = jnp.min(score, axis=0, keepdims=True)                 # (1, T)
    k_iota = jax.lax.broadcasted_iota(jnp.int32, (K, T), 0)         # (K, T)
    idx = jnp.min(jnp.where(score == min_val, k_iota, K),
                  axis=0, keepdims=True)                            # (1, T)
    idx_ref[...] = idx[None].astype(jnp.int32)                      # (1, 1, T)

    # Gather selected codebook vectors with a one-hot matmul: (C, K) @ (K, T) -> (C, T).
    onehot = (k_iota == idx).astype(w.dtype)                        # (K, T)
    q = jnp.dot(w, onehot, preferred_element_type=jnp.float32,
                precision=jax.lax.Precision.HIGHEST)                # (C, T)
    q_ref[...] = q[None].astype(q_ref.dtype)


def _round_up(x, m):
    return -(-x // m) * m


def _vmem_budget():
    """(physical capacity, scoped limit to request) in bytes, per TPU generation."""
    try:
        cap = int(pltpu.get_tpu_info().vmem_capacity_bytes)
    except Exception:
        cap = 64 * 1024 * 1024  # conservative fallback (v7x physical VMEM per TC)
    # Raise the scoped limit above the default (16 MiB v5e / 32 MiB v6e-v7x) but keep headroom.
    limit = min(int(cap * 0.75), 96 * 1024 * 1024)
    return cap, limit


def _pick_tile_hw(hw, C, K, x_bytes, batch, budget_bytes):
    """Largest 128-multiple spatial tile that fits the VMEM byte budget.

    Per-lane (per spatial element) VMEM cost:
      x block   : C * x_bytes, double-buffered      -> 2*C*x_bytes
      q block   : C * x_bytes, double-buffered      -> 2*C*x_bytes
      idx block : 4 bytes (int32), double-buffered  -> 8
      (K, T) f32 intermediates (score, iota, onehot, temps) ~ 4 arrays -> 16*K
    """
    per_lane = 4 * C * x_bytes + 8 + 16 * K
    tile = budget_bytes // per_lane
    # Keep at least ~4 grid steps total for megacore sharding (v7x: 2 TCs) and pipelining.
    min_steps = 4
    if batch < min_steps:
        tiles_wanted = -(-min_steps // batch)
        tile = min(tile, -(-hw // tiles_wanted))
    tile = min(tile, hw, 64 * 1024)
    tile = max(128, (tile // 128) * 128)
    return int(tile)


@functools.partial(jax.jit, static_argnames=("tile_hw",))
def nearest_embed_ema_forward(x, weight, *, tile_hw=None):
    """x: (B, C, H, W), weight: (C, K). Returns (result (B,C,H,W), argmin (B,H,W))."""
    B, C, H, W = x.shape
    K = weight.shape[1]
    HW = H * W
    x_bytes = jnp.dtype(x.dtype).itemsize

    _, vmem_limit = _vmem_budget()
    if tile_hw is None:
        # ~60% of the scoped limit goes to blocks + intermediates; rest is compiler headroom.
        tile_hw = _pick_tile_hw(HW, C, K, x_bytes, B, int(vmem_limit * 0.6))

    # Pad the spatial extent to a multiple of the tile (trimmed after the call).
    HW_pad = _round_up(HW, tile_hw)
    x3 = x.reshape(B, C, HW)                     # pure view, channels-first preserved
    if HW_pad != HW:
        x3 = jnp.pad(x3, ((0, 0), (0, 0), (0, HW_pad - HW)))

    # Precomputed once in the wrapper (constant-index blocks -> fetched once across the grid).
    w32 = weight.astype(jnp.float32)
    w2 = jnp.sum(w32 * w32, axis=0, keepdims=True).T            # (K, 1) f32, ||w_k||^2
    wt2 = (jnp.transpose(weight) * jnp.asarray(-2.0, weight.dtype))  # (K, C) = -2 W^T

    grid = (B, HW_pad // tile_hw)

    q3, idx3 = pl.pallas_call(
        _nearest_embed_kernel,
        out_shape=(
            jax.ShapeDtypeStruct((B, C, HW_pad), x.dtype),
            jax.ShapeDtypeStruct((B, 1, HW_pad), jnp.int32),
        ),
        grid_spec=pltpu.PrefetchScalarGridSpec(
            num_scalar_prefetch=0,
            grid=grid,
            in_specs=[
                pl.BlockSpec((1, C, tile_hw), lambda b, t: (b, 0, t)),
                # Constant-index codebook blocks: DMA'd only once across the grid.
                pl.BlockSpec((C, K), lambda b, t: (0, 0)),
                pl.BlockSpec((K, C), lambda b, t: (0, 0)),
                pl.BlockSpec((K, 1), lambda b, t: (0, 0)),
            ],
            out_specs=[
                pl.BlockSpec((1, C, tile_hw), lambda b, t: (b, 0, t)),
                pl.BlockSpec((1, 1, tile_hw), lambda b, t: (b, 0, t)),
            ],
        ),
        compiler_params=pltpu.CompilerParams(
            dimension_semantics=("parallel", "parallel"),
            vmem_limit_bytes=vmem_limit,
        ),
    )(x3, weight, wt2, w2)

    q3 = q3[:, :, :HW]
    idx3 = idx3[:, :, :HW]
    result = q3.reshape(B, C, H, W)              # pure view, no transpose
    argmin = idx3.reshape(B, H, W)
    return result, argmin


def _reference_forward(x, weight):
    # Pure-JAX reference mirroring the PyTorch forward (eval mode).
    B, C, H, W = x.shape
    xe = x[:, :, :, :, None]                              # (B, C, H, W, 1)
    we = weight.reshape(C, 1, 1, weight.shape[1])          # (C, 1, 1, K)
    dist = jnp.linalg.norm(xe - we, ord=2, axis=1)         # (B, H, W, K)
    argmin = jnp.argmin(dist, axis=-1)                     # (B, H, W)
    gathered = weight.T[argmin.reshape(-1)]                # (B*H*W, C)
    result = jnp.transpose(gathered.reshape(B, H, W, C), (0, 3, 1, 2))
    return result, argmin


if __name__ == "__main__":
    # Module hyperparameters (synthetic, deterministic init).
    num_embeddings = 32   # K
    embeddings_dim = 4    # C (= emb_dim = channel dim of x)

    key = jax.random.PRNGKey(0)
    k_w, k_x = jax.random.split(key)

    # embed = torch.rand(embeddings_dim, num_embeddings)  -> uniform [0, 1)
    weight = jax.random.uniform(k_w, (embeddings_dim, num_embeddings), dtype=jnp.float32)

    # Input x: (batch, emb_dim, H, W)
    x = jax.random.normal(k_x, (2, embeddings_dim, 16, 16), dtype=jnp.float32)

    result, argmin = nearest_embed_ema_forward(x, weight)
    jax.block_until_ready((result, argmin))

    # Sanity check against a pure-JAX reference of the PyTorch forward.
    ref_result, ref_argmin = _reference_forward(x, weight)
    np.testing.assert_array_equal(np.asarray(argmin), np.asarray(ref_argmin))
    np.testing.assert_allclose(np.asarray(result), np.asarray(ref_result), rtol=1e-5, atol=1e-5)

    print("KERNEL_OK")
</pallas_src>

<mosaic_0001>
module attributes {stable_mosaic.version = 11 : i64} {
  func.func @_nearest_embed_kernel(%arg0: i32, %arg1: i32, %arg2: memref<1x4x128xf32, #tpu.memory_space<vmem>>, %arg3: memref<4x32xf32, #tpu.memory_space<vmem>>, %arg4: memref<32x4xf32, #tpu.memory_space<vmem>>, %arg5: memref<32x1xf32, #tpu.memory_space<vmem>>, %arg6: memref<1x4x128xf32, #tpu.memory_space<vmem>>, %arg7: memref<1x1x128xi32, #tpu.memory_space<vmem>>) attributes {dimension_semantics = [#tpu.dimension_semantics<parallel>, #tpu.dimension_semantics<parallel>], iteration_bounds = array<i64: 2, 2>, scalar_prefetch = 0 : i64, scratch_operands = 0 : i64, tpu.core_type = #tpu.core_type<tc>, window_params = [{transform_indices = @transform_0, window_bounds = array<i64: 1, 4, 128>}, {pipeline_mode = #tpu.pipeline_mode<synchronous>, transform_indices = @transform_1, window_bounds = array<i64: 4, 32>}, {pipeline_mode = #tpu.pipeline_mode<synchronous>, transform_indices = @transform_2, window_bounds = array<i64: 32, 4>}, {pipeline_mode = #tpu.pipeline_mode<synchronous>, transform_indices = @transform_3, window_bounds = array<i64: 32, 1>}, {transform_indices = @transform_4, window_bounds = array<i64: 1, 4, 128>}, {transform_indices = @transform_5, window_bounds = array<i64: 1, 1, 128>}]} {
    %c0 = arith.constant 0 : index
    %c0_0 = arith.constant 0 : index
    %c0_1 = arith.constant 0 : index
    %0 = vector.load %arg2[%c0, %c0_0, %c0_1] : memref<1x4x128xf32, #tpu.memory_space<vmem>>, vector<1x4x128xf32>
    %1 = vector.shape_cast %0 : vector<1x4x128xf32> to vector<4x128xf32>
    %c0_2 = arith.constant 0 : index
    %c0_3 = arith.constant 0 : index
    %2 = vector.load %arg3[%c0_2, %c0_3] : memref<4x32xf32, #tpu.memory_space<vmem>>, vector<4x32xf32>
    %c0_4 = arith.constant 0 : index
    %c0_5 = arith.constant 0 : index
    %3 = vector.load %arg4[%c0_4, %c0_5] : memref<32x4xf32, #tpu.memory_space<vmem>>, vector<32x4xf32>
    %cst = arith.constant dense<0.000000e+00> : vector<32x128xf32>
    %4 = tpu.matmul %3, %1, %cst {dimension_numbers = #tpu.dot_dimension_numbers<[1], [0], [0], [1], [0, 0, 1, 1], [], []>, precision = #tpu.contract_precision<fp32>} : vector<32x4xf32>, vector<4x128xf32>, vector<32x128xf32> -> vector<32x128xf32>
    %c0_6 = arith.constant 0 : index
    %c0_7 = arith.constant 0 : index
    %5 = vector.load %arg5[%c0_6, %c0_7] : memref<32x1xf32, #tpu.memory_space<vmem>>, vector<32x1xf32>
    %6 = vector.broadcast %5 : vector<32x1xf32> to vector<32x128xf32>
    %7 = arith.addf %6, %4 : vector<32x128xf32>
    %cst_8 = arith.constant dense<0x7F800000> : vector<128xf32>
    %8 = vector.multi_reduction <minimumf>, %7, %cst_8 [0] : vector<32x128xf32> to vector<128xf32>
    %9 = vector.shape_cast %8 : vector<128xf32> to vector<1x128xf32>
    %10 = tpu.iota {dimensions = array<i32: 0>} : vector<32x128xi32>
    %11 = vector.broadcast %9 : vector<1x128xf32> to vector<32x128xf32>
    %12 = arith.cmpf oeq, %7, %11 : vector<32x128xf32>
    %c32_i32 = arith.constant 32 : i32
    %13 = vector.broadcast %c32_i32 : i32 to vector<32x128xi32>
    %14 = arith.select %12, %10, %13 : vector<32x128xi1>, vector<32x128xi32>
    %cst_9 = arith.constant dense<2147483647> : vector<128xi32>
    %15 = vector.multi_reduction <minsi>, %14, %cst_9 [0] : vector<32x128xi32> to vector<128xi32>
    %16 = vector.shape_cast %15 : vector<128xi32> to vector<1x128xi32>
    %17 = vector.shape_cast %16 : vector<1x128xi32> to vector<1x1x128xi32>
    %c0_10 = arith.constant 0 : index
    %c0_11 = arith.constant 0 : index
    %c0_12 = arith.constant 0 : index
    %18 = vector.load %arg7[%c0_10, %c0_11, %c0_12] : memref<1x1x128xi32, #tpu.memory_space<vmem>>, vector<1x1x128xi32>
    tpu.vector_store %arg7[%c0_10, %c0_11, %c0_12], %17 {strides = array<i32>} : memref<1x1x128xi32, #tpu.memory_space<vmem>>, vector<1x1x128xi32>,
    %19 = vector.broadcast %16 : vector<1x128xi32> to vector<32x128xi32>
    %20 = arith.cmpi eq, %10, %19 : vector<32x128xi32>
    %21 = arith.extui %20 : vector<32x128xi1> to vector<32x128xi32>
    %22 = arith.sitofp %21 : vector<32x128xi32> to vector<32x128xf32>
    %cst_13 = arith.constant dense<0.000000e+00> : vector<4x128xf32>
    %23 = tpu.matmul %2, %22, %cst_13 {dimension_numbers = #tpu.dot_dimension_numbers<[1], [0], [0], [1], [0, 0, 1, 1], [], []>, precision = #tpu.contract_precision<fp32>} : vector<4x32xf32>, vector<32x128xf32>, vector<4x128xf32> -> vector<4x128xf32>
    %24 = vector.shape_cast %23 : vector<4x128xf32> to vector<1x4x128xf32>
    %c0_14 = arith.constant 0 : index
    %c0_15 = arith.constant 0 : index
    %c0_16 = arith.constant 0 : index
    %25 = vector.load %arg6[%c0_14, %c0_15, %c0_16] : memref<1x4x128xf32, #tpu.memory_space<vmem>>, vector<1x4x128xf32>
    tpu.vector_store %arg6[%c0_14, %c0_15, %c0_16], %24 {strides = array<i32>} : memref<1x4x128xf32, #tpu.memory_space<vmem>>, vector<1x4x128xf32>,
    return
  }
  func.func @transform_0(%arg0: i32, %arg1: i32) -> (i32, i32, i32) {
    %c0_i32 = arith.constant 0 : i32
    %c0_i32_0 = arith.constant 0 : i32
    return %arg0, %c0_i32, %arg1 : i32, i32, i32
  }
  func.func @transform_1(%arg0: i32, %arg1: i32) -> (i32, i32) {
    %c0_i32 = arith.constant 0 : i32
    %c0_i32_0 = arith.constant 0 : i32
    %c0_i32_1 = arith.constant 0 : i32
    return %c0_i32, %c0_i32_0 : i32, i32
  }
  func.func @transform_2(%arg0: i32, %arg1: i32) -> (i32, i32) {
    %c0_i32 = arith.constant 0 : i32
    %c0_i32_0 = arith.constant 0 : i32
    %c0_i32_1 = arith.constant 0 : i32
    return %c0_i32, %c0_i32_0 : i32, i32
  }
  func.func @transform_3(%arg0: i32, %arg1: i32) -> (i32, i32) {
    %c0_i32 = arith.constant 0 : i32
    %c0_i32_0 = arith.constant 0 : i32
    %c0_i32_1 = arith.constant 0 : i32
    return %c0_i32, %c0_i32_0 : i32, i32
  }
  func.func @transform_4(%arg0: i32, %arg1: i32) -> (i32, i32, i32) {
    %c0_i32 = arith.constant 0 : i32
    %c0_i32_0 = arith.constant 0 : i32
    return %arg0, %c0_i32, %arg1 : i32, i32, i32
  }
  func.func @transform_5(%arg0: i32, %arg1: i32) -> (i32, i32, i32) {
    %c0_i32 = arith.constant 0 : i32
    %c0_i32_0 = arith.constant 0 : i32
    return %arg0, %c0_i32, %arg1 : i32, i32, i32
  }
}

</mosaic_0001>

<bundles_post_ra>
// kernel: nearest_embed_ema_forward.1
= control target key start
LH: loop header
LB: loop body
LE: loop exit
PB: predicated region body
PF: predicated region fallthrough
CT: control target
= control target key end

     0   :  { %s1078_s18 = smov 0   ;;  %s1080_s19 = smov 0   ;;  %s1245_s0 = inlined_call_operand.vmem [shape: f32[2,4,256], index: 0, kind: input, shape index: {}]   ;;  %s1246_s1 = inlined_call_operand.vmem [shape: f32[4,32], index: 1, kind: input, shape index: {}]   ;;  %s1247_s2 = inlined_call_operand.vmem [shape: f32[32,4], index: 2, kind: input, shape index: {}]   ;;  %s1248_s3 = inlined_call_operand.vmem [shape: f32[32,1], index: 3, kind: input, shape index: {}]   ;;  %s1249_s4 = inlined_call_operand.vmem [shape: f32[2,4,256], index: 4, kind: output, shape index: {0}]   ;;  %s1250_s5 = inlined_call_operand.vmem [shape: s32[2,1,256], index: 5, kind: output, shape index: {1}]  }
   0x1   :  { %s1082_s20 = smov 0   ;;  %s1084_s21 = smov 0  }
   0x2   :  { %s1086_s22 = smov 0  }
   0x3 LB: > { %s25_s23 = sadd.s32 1, %s1035_s20  ;;  %s28_s24 = sadd.s32 1, %s1039_s21  ;;  %s1043_s22 = sphi %s1086_s22, %s16_s22   ;;  %s1039_s21 = sphi %s1084_s21, %s1254_s21   ;;  %s1035_s20 = sphi %s1082_s20, %s1253_s20   ;;  %s1031_s19 = sphi %s1080_s19, %s1252_s19   ;;  %s1027_s18 = sphi %s1078_s18, %s1251_s18  }
   0x4   : > { %p26_p0 = scmp.ge.s32.totalorder %s25_s23, 2  ;;  %p936_p1 = scmp.ge.s32.totalorder %s1043_s22, 1 }
   0x5   : > { %p211_p2 = scmp.lt.s32.totalorder %s1043_s22, 5 }
   0x6   : > { %s1256_s23 = smov (%p26_p0, %s25_s23), 0  ;;  %s1258_s24 = smov (!%p26_p0, %s28_s24), %s1039_s21 }
   0x7   : > { %p212_p3 = pnand %p936_p1, %p211_p2  ;;  %p30_p4 = scmp.ge.s32.totalorder %s1258_s24, 2 }
   0x8   : > { %p252_p5 = scmp.lt.s32.totalorder (!%p212_p3), %s1031_s19, 1  ;;  %p254_p6 = scmp.lt.s32.totalorder (!%p212_p3), %s1027_s18, 1 }
   0x9   : > { %s1260_s24 = smov (%p30_p4, %s1258_s24), 0  ;;  %215 = sbr.rel (%p212_p3) target bundleno = 420 (0x1a4), region = 36 }
   0xe   : > { %v277_v0 = vld [vmem:[%s1247_s2] sm:$0xff]  ;;  %vm281_vm0 = vcmask 31744   ;;  %v278_v1 = vld [vmem:[%s1247_s2 + $0x8] sm:$0xff]  ;;  %s1262_s19 = smov (!%p252_p5, %s1031_s19), 1  ;;  %s1264_s18 = smov (!%p254_p6, %s1027_s18), 1  ;;  %v279_v6 = vld [vmem:[%s1247_s2 + $0x10] sm:$0xff] }
   0xf   : > { %v283_v2 = vsel %vm281_vm0, %v277_v0, 0  ;;  %v286_v3 = vsel %vm281_vm0, %v278_v1, 0  ;;  %s937_s6 = sshll.u32 %s1262_s19, 1  ;;  %vm294_vm1 = vcmask 1043456   ;;  %v289_v10 = vsel %vm281_vm0, %v279_v6, 0  ;;  %v280_v18 = vld [vmem:[%s1247_s2 + $0x18] sm:$0xff] }
  0x10   : > { %v1116_v4 = vand.u32 4294901760, %v283_v2  ;;  %v1118_v5 = vand.u32 4294901760, %v286_v3  ;;  %s1124_s7 = sadd.s32 %s937_s6, %s1264_s18  ;;  %v331_v15 = vand.u32 4294901760, %v289_v10  ;;  %v292_v23 = vsel %vm281_vm0, %v280_v18, 0  ;;  %v537_v34 = vld [vmem:[%s1248_s3] sm:$0xff]  ;;  %v539_v37 = vld [vmem:[%s1248_s3 + $0x10] sm:$0xff] }
  0x11   : > { %s938_s8 = sshll.u32 %s1124_s7, 2  ;;  %v339_v27 = vand.u32 4294901760, %v292_v23  ;;  %v1045_v35 = vmov 0   ;;  %v538_v38 = vld [vmem:[%s1248_s3 + $0x8] sm:$0xff]  ;;  %v540_v39 = vld [vmem:[%s1248_s3 + $0x18] sm:$0xff]  ;;  %vm615_vm2 = vcmask 261120   ;;  %s274_s6 = scalar_lea.vmem %s1250_s5, %s1124_s7 }
  0x12   : > { %v316_v7 = vsub.f32 %v283_v2, %v1116_v4  ;;  %v324_v8 = vsub.f32 %v286_v3, %v1118_v5  ;;  %s259_s11 = scalar_lea.vmem %s1245_s0, %s938_s8  ;;  %v332_v21 = vsub.f32 %v289_v10, %v331_v15  ;;  %1003 = vset.pattern.permute.xlu0 %v1045_v35  ;;  %1004 = vset.pattern.permute.xlu1 %v1045_v35 }
  0x13   : > { %v275_v11 = vld [vmem:[%s259_s11] sm:$0xf]  ;;  %v340_v30 = vsub.f32 %v292_v23, %v339_v27  ;;  %543 = vperm.xlu0 %1003, %v537_v34   ;;  %553 = vperm.xlu1 %1004, %v539_v37   ;;  %s267_s11 = scalar_lea.vmem %s1249_s4, %s938_s8 }
  0x14   : > { %v317_v9 = vand.u32 4294901760, %v316_v7  ;;  %v296_v13 = vsel %vm294_vm1, %v275_v11, 0  ;;  %v325_v14 = vand.u32 4294901760, %v324_v8  ;;  %v333_v26 = vand.u32 4294901760, %v332_v21 }
  0x15   : > { %v313_v16 = vand.u32 4294901760, %v296_v13  ;;  %v341_v32 = vand.u32 4294901760, %v340_v30 }
  0x16   : > { %v318_v12 = vsub.f32 %v316_v7, %v317_v9  ;;  %v326_v20 = vsub.f32 %v324_v8, %v325_v14  ;;  %v334_v29 = vsub.f32 %v332_v21, %v333_v26 }
  0x17   : > { %314 = vmatpush.msra.mxu0 %v313_v16  ;;  %v364_v19 = vsub.f32 %v296_v13, %v313_v16  ;;  %441 = vmatpush.msra.mxu3 %v313_v16  ;;  %v342_v33 = vsub.f32 %v340_v30, %v341_v32 }
  0x18   : > { %v319_v17 = vand.u32 4294901760, %v318_v12  ;;  %445 = vmatmul.f32.vlgmr.msra.gmra.mxu3 %v317_v9  ;;  %v327_v25 = vand.u32 4294901760, %v326_v20  ;;  %v335_v31 = vand.u32 4294901760, %v334_v29 }
  0x19   : > { %403 = vmatpush.msra.mxu2 %v364_v19  ;;  %v365_v22 = vand.u32 4294901760, %v364_v19  ;;  %v343_v36 = vand.u32 4294901760, %v342_v33 }
  0x1a   : > { %320 = vmatmul.f32.vlgmr.msra.gmra.mxu0 %v319_v17  ;;  %406 = vmatmul.f32.vlgmr.msra.gmra.mxu2 %v316_v7 }
  0x1b   : > { %v366_v24 = vsub.f32 %v364_v19, %v365_v22  ;;  %485 = vmatpush.msrb.mxu0 %v365_v22  ;;  %548 = vperm.xlu0 %1003, %v538_v38  }
  0x1c   : > { %558 = vperm.xlu1 %1004, %v540_v39  }
  0x1d   : > { %v367_v28 = vand.u32 4294901760, %v366_v24 }
  0x1f   : > { %368 = vmatpush.msra.mxu1 %v367_v28 }
  0x20   : > { %370 = vmatmul.f32.vlgmr.msra.gmra.mxu1 %v1116_v4  ;;  %451 = vmatmul.f32.gmra.mxu3 %v325_v14 }
  0x21   : > { %519 = vmatpush.msrb.mxu1 %v313_v16 }
  0x22   : > { %328 = vmatmul.f32.gmra.mxu0 %v327_v25  ;;  %411 = vmatmul.f32.gmra.mxu2 %v324_v8 }
  0x28   : > { %374 = vmatmul.f32.gmra.mxu1 %v1118_v5  ;;  %457 = vmatmul.f32.gmra.mxu3 %v333_v26 }
  0x2a   : > { %336 = vmatmul.f32.gmra.mxu0 %v335_v31  ;;  %416 = vmatmul.f32.gmra.mxu2 %v332_v21 }
  0x30   : > { %378 = vmatmul.f32.gmra.mxu1 %v331_v15  ;;  %463 = vmatmul.f32.gmra.mxu3 %v341_v32  ;;  %v574_v32 = vlaneseq }
  0x32   : > { %344 = vmatmul.f32.gmra.mxu0 %v343_v36  ;;  %421 = vmatmul.f32.gmra.mxu2 %v340_v30  ;;  %v1156_v35 = vshrl.u32 %v574_v32, 7 }
  0x34   : > { %v1159_v38 = vadd.s32 8, %v1156_v35  ;;  %v1162_v39 = vadd.s32 16, %v1156_v35 }
  0x38   : > { %382 = vmatmul.f32.gmra.mxu1 %v339_v27 }
  0x3a   : > { %487 = vmatmul.f32.vlgmr.msrb.gmra.mxu0 %v1116_v4 }
  0x40   : > { %521 = vmatmul.f32.vlgmr.msrb.gmra.mxu1 %v1116_v4 }
  0x42   : > { %491 = vmatmul.f32.gmra.mxu0 %v1118_v5 }
  0x48   : > { %525 = vmatmul.f32.gmra.mxu1 %v1118_v5 }
  0x4a   : > { %495 = vmatmul.f32.gmra.mxu0 %v331_v15 }
  0x50   : > { %529 = vmatmul.f32.gmra.mxu1 %v331_v15 }
  0x52   : > { %499 = vmatmul.f32.gmra.mxu0 %v339_v27 }
  0x58   : > { %533 = vmatmul.f32.gmra.mxu1 %v339_v27 }
  0x85   : > { %v544_v62 = vpop.permute.xlu0 %543  ;;  %v554_v4 = vpop.permute.xlu1 %553 }
  0x8d   : > { %v549_v17 = vpop.permute.xlu0 %548 }
  0x8e   : > { %v559_v24 = vpop.permute.xlu1 %558 }
  0x97   : > { %v321_v40 = vpop.f32.mrf.mxu0 }
  0x9b   : > { %v446_v48 = vpop.f32.mrf.mxu3 }
  0x9d   : > { %v371_v42 = vpop.f32.mrf.mxu1  ;;  %v407_v45 = vpop.f32.mrf.mxu2 }
  0x9e   : > { %v372_v60 = vadd.f32 %v371_v42, %v321_v40  ;;  %v1165_v40 = vadd.s32 24, %v1156_v35  ;;  %v276_v42 = vld [vmem:[%s1246_s1] sm:$0xf] }
  0x9f   : > { %v329_v41 = vpop.f32.mrf.mxu0 }
  0xa0   : > { %v408_v2 = vadd.f32 %v407_v45, %v372_v60 }
  0xa2   : > { %v447_v9 = vadd.f32 %v446_v48, %v408_v2 }
  0xa3   : > { %v452_v52 = vpop.f32.mrf.mxu3 }
  0xa5   : > { %v375_v44 = vpop.f32.mrf.mxu1  ;;  %v412_v51 = vpop.f32.mrf.mxu2 }
  0xa6   : > { %v376_v58 = vadd.f32 %v375_v44, %v329_v41 }
  0xa7   : > { %v337_v43 = vpop.f32.mrf.mxu0 }
  0xa8   : > { %v413_v63 = vadd.f32 %v412_v51, %v376_v58 }
  0xaa   : > { %v453_v6 = vadd.f32 %v452_v52, %v413_v63  ;;  %v1047_v63 = vmov 1.0  }
  0xab   : > { %v458_v56 = vpop.f32.mrf.mxu3 }
  0xad   : > { %v379_v47 = vpop.f32.mrf.mxu1  ;;  %v417_v55 = vpop.f32.mrf.mxu2 }
  0xae   : > { %v380_v61 = vadd.f32 %v379_v47, %v337_v43  ;;  %v617_v47 = vsel %vm615_vm2, %v276_v42, 0 }
  0xaf   : > { %v345_v46 = vpop.f32.mrf.mxu0  ;;  %v1174_v51 = vand.u32 4294901760, %v617_v47 }
  0xb0   : > { %v418_v3 = vadd.f32 %v417_v55, %v380_v61  ;;  %v1046_v61 = vmov 0.0  }
  0xb2   : > { %v459_v10 = vadd.f32 %v458_v56, %v418_v3 }
  0xb3   : > { %v464_v8 = vpop.f32.mrf.mxu3 }
  0xb5   : > { %v383_v49 = vpop.f32.mrf.mxu1  ;;  %v422_v1 = vpop.f32.mrf.mxu2 }
  0xb6   : > { %v384_v0 = vadd.f32 %v383_v49, %v345_v46 }
  0xb7   : > { %v488_v50 = vpop.f32.mrf.mxu0 }
  0xb8   : > { %v423_v7 = vadd.f32 %v422_v1, %v384_v0  ;;  %v489_v13 = vadd.f32 %v488_v50, %v447_v9 }
  0xba   : > { %v465_v14 = vadd.f32 %v464_v8, %v423_v7 }
  0xbd   : > { %v522_v54 = vpop.f32.mrf.mxu1 }
  0xbe   : > { %v523_v18 = vadd.f32 %v522_v54, %v489_v13  ;;  %v1177_v54 = vsub.f32 %v617_v47, %v1174_v51 }
  0xbf   : > { %v492_v53 = vpop.f32.mrf.mxu0 }
  0xc0   : > { %v493_v11 = vadd.f32 %v492_v53, %v453_v6  ;;  %v561_v25 = vadd.f32 %v544_v62, %v523_v18 }
  0xc5   : > { %v526_v57 = vpop.f32.mrf.mxu1 }
  0xc6   : > { %v527_v16 = vadd.f32 %v526_v57, %v493_v11  ;;  %v641_v57 = vand.u32 4294901760, %v1177_v54 }
  0xc7   : > { %v496_v59 = vpop.f32.mrf.mxu0 }
  0xc8   : > { %v497_v15 = vadd.f32 %v496_v59, %v459_v10  ;;  %v562_v22 = vadd.f32 %v549_v17, %v527_v16  ;;  %v642_v60 = vsub.f32 %v1177_v54, %v641_v57 }
  0xca   : > { %v565_v28 = vmin.f32 %v561_v25, %v562_v22  ;;  %v643_v10 = vand.u32 4294901760, %v642_v60 }
  0xcd   : > { %v530_v5 = vpop.f32.mrf.mxu1 }
  0xce   : > { %v531_v20 = vadd.f32 %v530_v5, %v497_v15 }
  0xcf   : > { %v500_v12 = vpop.f32.mrf.mxu0 }
  0xd0   : > { %v501_v19 = vadd.f32 %v500_v12, %v465_v14  ;;  %v563_v26 = vadd.f32 %v554_v4, %v531_v20 }
  0xd5   : > { %v534_v21 = vpop.f32.mrf.mxu1 }
  0xd6   : > { %v535_v23 = vadd.f32 %v534_v21, %v501_v19 }
  0xd8   : > { %v564_v27 = vadd.f32 %v559_v24, %v535_v23 }
  0xda   : > { %v566_v29 = vmin.f32 %v563_v26, %v564_v27 }
  0xdc   : > { %v567_v30 = vmin.f32 %v565_v28, %v566_v29 }
  0xde   : > { %v568_v31 = vrot.slane %v567_v30, 4 }
  0xe0   : > { %v569_v33 = vmin.f32 %v567_v30, %v568_v31 }
  0xe2   : > { %v570_v34 = vrot.slane %v569_v33, 2 }
  0xe4   : > { %v571_v36 = vmin.f32 %v569_v33, %v570_v34 }
  0xe6   : > { %v572_v37 = vrot.slane %v571_v36, 1 }
  0xe8   : > { %v573_v41 = vmin.f32 %v571_v36, %v572_v37 }
  0xea   : > { %vm579_vm3 = vcmp.eq.f32.partialorder %v561_v25, %v573_v41  ;;  %vm580_vm4 = vcmp.eq.f32.partialorder %v562_v22, %v573_v41  ;;  %vm581_vm5 = vcmp.eq.f32.partialorder %v563_v26, %v573_v41  ;;  %vm582_vm6 = vcmp.eq.f32.partialorder %v564_v27, %v573_v41 }
  0xeb   : > { %v583_v43 = vsel %vm579_vm3, %v1156_v35, 32  ;;  %v584_v44 = vsel %vm580_vm4, %v1159_v38, 32  ;;  %v585_v45 = vsel %vm581_vm5, %v1162_v39, 32  ;;  %v586_v46 = vsel %vm582_vm6, %v1165_v40, 32 }
  0xec   : > { %vm587_vm7 = vcmp.lt.s32.totalorder %v583_v43, %v584_v44  ;;  %vm589_vm8 = vcmp.lt.s32.totalorder %v585_v45, %v586_v46 }
  0xed   : > { %v588_v48 = vsel %vm587_vm7, %v583_v43, %v584_v44  ;;  %v590_v49 = vsel %vm589_vm8, %v585_v45, %v586_v46 }
  0xee   : > { %vm591_vm9 = vcmp.lt.s32.totalorder %v588_v48, %v590_v49 }
  0xef   : > { %v592_v50 = vsel %vm591_vm9, %v588_v48, %v590_v49 }
  0xf0   : > { %v593_v52 = vrot.slane %v592_v50, 4 }
  0xf2   : > { %vm594_vm10 = vcmp.lt.s32.totalorder %v592_v50, %v593_v52 }
  0xf3   : > { %v595_v53 = vsel %vm594_vm10, %v592_v50, %v593_v52 }
  0xf4   : > { %v596_v55 = vrot.slane %v595_v53, 2 }
  0xf6   : > { %vm597_vm11 = vcmp.lt.s32.totalorder %v595_v53, %v596_v55 }
  0xf7   : > { %v598_v56 = vsel %vm597_vm11, %v595_v53, %v596_v55 }
  0xf8   : > { %v599_v58 = vrot.slane %v598_v56, 1 }
  0xfa   : > { %vm600_vm12 = vcmp.lt.s32.totalorder %v598_v56, %v599_v58 }
  0xfb   : > { %v601_v59 = vsel %vm600_vm12, %v598_v56, %v599_v58 }
  0xfc   : > { %602 = vst [vmem:[%s274_s6] sm:$0x1] %v601_v59  ;;  %vm606_vm13 = vcmp.eq.s32.totalorder %v1165_v40, %v601_v59  ;;  %vm605_vm14 = vcmp.eq.s32.totalorder %v1162_v39, %v601_v59  ;;  %vm604_vm15 = vcmp.eq.s32.totalorder %v1159_v38, %v601_v59  ;;  %vm603_vm0 = vcmp.eq.s32.totalorder %v1156_v35, %v601_v59 }
  0xfd   : > { %v945_v62 = vsel %vm606_vm13, 1.0, %v1046_v61  ;;  %946 = vmatpush.msk.msrb.mxu2 %vm606_vm13, %v1047_v63  ;;  %v944_v0 = vsel %vm605_vm14, 1.0, %v1046_v61  ;;  %v943_v1 = vsel %vm604_vm15, 1.0, %v1046_v61  ;;  %v942_v2 = vsel %vm603_vm0, 1.0, %v1046_v61 }
  0xfe   : > { %v661_v3 = vsub.f32 %v945_v62, %v945_v62  ;;  %v667_v4 = vsub.f32 %v944_v0, %v944_v0  ;;  %v673_v5 = vsub.f32 %v943_v1, %v943_v1  ;;  %v679_v6 = vsub.f32 %v942_v2, %v942_v2 }
  0xff   : > { %947 = vmatpush.msk.msrb.mxu2 %vm605_vm14, %v1047_v63 }
 0x100   : > { %v662_v7 = vand.u32 4294901760, %v661_v3  ;;  %v668_v8 = vand.u32 4294901760, %v667_v4  ;;  %v674_v9 = vand.u32 4294901760, %v673_v5  ;;  %v680_v13 = vand.u32 4294901760, %v679_v6 }
 0x101   : > { %948 = vmatpush.msk.msrb.mxu2 %vm604_vm15, %v1047_v63 }
 0x102   : > { %v663_v11 = vsub.f32 %v661_v3, %v662_v7  ;;  %v669_v12 = vsub.f32 %v667_v4, %v668_v8  ;;  %v675_v15 = vsub.f32 %v673_v5, %v674_v9  ;;  %v681_v17 = vsub.f32 %v679_v6, %v680_v13 }
 0x103   : > { %949 = vmatpush.msk.msrb.mxu2 %vm603_vm0, %v1047_v63 }
 0x104   : > { %v664_v14 = vand.u32 4294901760, %v663_v11  ;;  %644 = vmatmul.f32.vlgmr.msrb.gmra.mxu2 %v643_v10  ;;  %v670_v16 = vand.u32 4294901760, %v669_v12  ;;  %v676_v18 = vand.u32 4294901760, %v675_v15  ;;  %v682_v19 = vand.u32 4294901760, %v681_v17 }
 0x105   : > { %703 = vmatpush.msra.mxu2 %v661_v3 }
 0x106   : > { %665 = vmatpush.msrb.mxu3 %v664_v14 }
 0x107   : > { %706 = vmatpush.msra.mxu2 %v667_v4 }
 0x108   : > { %671 = vmatpush.msrb.mxu3 %v670_v16 }
 0x109   : > { %709 = vmatpush.msra.mxu2 %v673_v5 }
 0x10a   : > { %677 = vmatpush.msrb.mxu3 %v676_v18 }
 0x10b   : > { %712 = vmatpush.msra.mxu2 %v679_v6 }
 0x10c   : > { %683 = vmatpush.msrb.mxu3 %v682_v19  ;;  %715 = vmatmul.f32.vlgmr.msra.gmra.mxu2 %v1177_v54 }
 0x10d   : > { %761 = vmatpush.msrb.mxu2 %v662_v7  ;;  %685 = vmatmul.f32.vlgmr.msrb.gmra.mxu3 %v1174_v51 }
 0x10e   : > { %950 = vmatpush.msk.msra.mxu3 %vm606_vm13, %v1047_v63 }
 0x10f   : > { %765 = vmatpush.msrb.mxu2 %v668_v8 }
 0x110   : > { %951 = vmatpush.msk.msra.mxu3 %vm605_vm14, %v1047_v63 }
 0x111   : > { %769 = vmatpush.msrb.mxu2 %v674_v9 }
 0x112   : > { %952 = vmatpush.msk.msra.mxu3 %vm604_vm15, %v1047_v63 }
 0x113   : > { %773 = vmatpush.msrb.mxu2 %v680_v13 }
 0x114   : > { %953 = vmatpush.msk.msra.mxu3 %vm603_vm0, %v1047_v63  ;;  %775 = vmatmul.f32.vlgmr.msrb.gmra.mxu2 %v1174_v51 }
 0x115   : > { %742 = vmatmul.f32.vlgmr.msra.gmra.mxu3 %v641_v57 }
 0x116   : > { %954 = vmatpush.msk.msrb.mxu3 %vm606_vm13, %v1047_v63 }
 0x118   : > { %955 = vmatpush.msk.msrb.mxu3 %vm605_vm14, %v1047_v63 }
 0x11a   : > { %956 = vmatpush.msk.msrb.mxu3 %vm604_vm15, %v1047_v63 }
 0x11c   : > { %957 = vmatpush.msk.msrb.mxu3 %vm603_vm0, %v1047_v63 }
 0x11d   : > { %800 = vmatmul.f32.vlgmr.msrb.gmra.mxu3 %v1174_v51 }
 0x187   : > { %v645_v20 = vpop.f32.mrf.mxu2 }
 0x18f   : > { %v716_v22 = vpop.f32.mrf.mxu2 }
 0x190   : > { %v686_v21 = vpop.f32.mrf.mxu3 }
 0x191   : > { %v687_v23 = vadd.f32 %v686_v21, %v645_v20 }
 0x193   : > { %v717_v25 = vadd.f32 %v716_v22, %v687_v23 }
 0x197   : > { %v776_v27 = vpop.f32.mrf.mxu2 }
 0x198   : > { %v743_v24 = vpop.f32.mrf.mxu3 }
 0x199   : > { %v744_v26 = vadd.f32 %v743_v24, %v717_v25 }
 0x19b   : > { %v777_v28 = vadd.f32 %v776_v27, %v744_v26 }
 0x1a0   : > { %v801_v29 = vpop.f32.mrf.mxu3 }
 0x1a1   : > { %v802_v30 = vadd.f32 %v801_v29, %v777_v28 }
 0x1a3   : > { %804 = vst [vmem:[%s267_s11] sm:$0xf] %v802_v30 }
 0x1a4 PF: > { %s16_s22 = sadd.s32 1, %s1043_s22   ;;  %s1251_s18 = smov %s1035_s20 }
 0x1a5   : > { %p13_p7 = scmp.ge.s32.totalorder %s16_s22, 6   ;;  %s1252_s19 = smov %s1039_s21 }
 0x1a6   : > { %s1253_s20 = smov %s1256_s23  ;;  %s1254_s21 = smov %s1260_s24 }
 0x1a7   :  { %15 = sbr.rel (!%p13_p7) target bundleno = 3 (0x3), region = 78 }

</bundles_post_ra>
